<compile_context>
chip_gen: v6e
topology: v6e:2x2x1
jax: 0.10.0
libtpu: 0.0.40
codegen_flags: <defaults>
</compile_context>

<pallas_src>
import math

import jax
import jax.numpy as jnp
from jax.experimental import pallas as pl
from jax.experimental.pallas import tpu as pltpu


_INV_SQRT2 = 0.7071067811865476


def _gelu_exact(x):
    # matches torch.nn.GELU() default (erf-based)
    return 0.5 * x * (1.0 + jax.lax.erf(x * _INV_SQRT2))


# ----------------------------------------------------------------------------
# The single fused kernel: per grid step = one image.
# ----------------------------------------------------------------------------
def _make_fused_kernel(conv_meta, n_hidden_ff):
    """conv_meta: tuple of (H, W, Cin, Cout, K) per conv layer."""
    n_conv = len(conv_meta)

    def kernel(*refs):
        x_ref = refs[0]
        pos = 1
        conv_refs = []
        for _ in range(n_conv):
            conv_refs.append((refs[pos], refs[pos + 1]))
            pos += 2
        ff_refs = []
        for _ in range(n_hidden_ff):
            ff_refs.append((refs[pos], refs[pos + 1]))
            pos += 2
        wo_ref, bo_ref = refs[pos], refs[pos + 1]
        o_ref = refs[pos + 2]

        # Row-padded layer-1 input: (H + 2*pad, W*Cin), lane = w*Cin + ci.
        xp = x_ref[0]
        feat = None
        for li, (H, W, Cin, Cout, K) in enumerate(conv_meta):
            w_ref, b_ref = conv_refs[li]
            # Conv: K matmuls over the kh taps.  kw shifts, the zero
            # width-halo, and the even/odd output interleave are all baked
            # into the prepped weight -> no lane-offset slices at runtime.
            acc = jnp.dot(xp[0:H, :], w_ref[0],
                          preferred_element_type=jnp.float32)
            for kh in range(1, K):
                acc = acc + jnp.dot(xp[kh:kh + H, :], w_ref[kh],
                                    preferred_element_type=jnp.float32)
            y = jnp.maximum(acc + b_ref[...], 0.0)        # (H, W*Cout)

            # 2x2 stride-2 max-pool fully in registers:
            #   * row-pair max over adjacent sublanes
            #   * lane order of y is [even w | odd w] (baked in the weight),
            #     so the width pool is ONE half/half lane max per row and the
            #     result lanes come out in natural (w, c) order.
            Hh, Wh = H // 2, W // 2
            half = Wh * Cout
            rows = []
            for i in range(Hh):
                r = jnp.maximum(y[2 * i:2 * i + 1, :], y[2 * i + 1:2 * i + 2, :])
                rows.append(jnp.maximum(r[:, :half], r[:, half:]))   # (1, Wh*Cout)

            if li + 1 < n_conv:
                # Next layer only needs a height halo (width halo is folded
                # into the next layer's weight) -> pure sublane concatenation.
                padn = conv_meta[li + 1][4] // 2
                zr = jnp.zeros((1, Wh * Cout), jnp.float32)
                xp = jnp.concatenate([zr] * padn + rows + [zr] * padn, axis=0)
            else:
                # Flatten in (h, w, c) order (the torch CHW order is folded
                # into the first FF weight at prep time).
                feat = jnp.concatenate(rows, axis=1)       # (1, Hh*Wh*Cout)

        # Feed-forward stack + head, all in one pass (no HBM round trips).
        h = feat
        for (wf_ref, bf_ref) in ff_refs:
            h = _gelu_exact(
                jnp.dot(h, wf_ref[...], preferred_element_type=jnp.float32)
                + bf_ref[...])
        # Linear(F,1) as a VPU multiply + lane reduction (no N=1 MXU matmul).
        s = jnp.sum(h * wo_ref[...], axis=1, keepdims=True) + bo_ref[...]
        o_ref[0] = jax.nn.sigmoid(_gelu_exact(s))

    return kernel


# ----------------------------------------------------------------------------
# Parameter init (synthetic, torch-like semantics) + kernel-ready preparation
# ----------------------------------------------------------------------------
def init_discriminator_params(key, input_shape, n_conv_layers, n_ff_layers, kernel_size):
    H, W, C = input_shape  # (H, W, C) as in the PyTorch constructor
    params = {"conv": [], "ff": []}
    cin = C
    for _ in range(n_conv_layers):
        key, kw_, kb_ = jax.random.split(key, 3)
        cout = cin * 2
        w = jax.random.normal(kw_, (kernel_size, kernel_size, cin, cout), jnp.float32) * 0.1
        b = jax.random.normal(kb_, (cout,), jnp.float32) * 0.01
        params["conv"].append((w, b))
        cin = cout
    feat = (H >> n_conv_layers) * (W >> n_conv_layers) * cin
    # FF weight rows are in torch's CHW-flatten order (see prepare_params).
    for _ in range(n_ff_layers - 1):
        key, kw_, kb_ = jax.random.split(key, 3)
        w = jax.random.normal(kw_, (feat, feat), jnp.float32) * (1.0 / math.sqrt(feat))
        b = jax.random.normal(kb_, (feat,), jnp.float32) * 0.01
        params["ff"].append((w, b))
    key, kw_, kb_ = jax.random.split(key, 3)
    params["ff_out"] = (
        jax.random.normal(kw_, (feat, 1), jnp.float32) * (1.0 / math.sqrt(feat)),
        jax.random.normal(kb_, (1,), jnp.float32) * 0.01,
    )
    return params


def prepare_params(params, input_shape, kernel_size):
    """One-time transforms: banded conv weight (kw shift + width halo + even/odd
    output interleave folded in), bias tiling, torch CHW-flatten perm folded
    into the first FF weight.  Zero runtime cost."""
    H, W, C = input_shape
    K = kernel_size
    pad = K // 2
    conv_prep, conv_meta = [], []
    h, w_sp, c = H, W, C
    for (wt, b) in params["conv"]:
        Kh, Kw, cin, cout = wt.shape
        assert (Kh, Kw, cin) == (K, K, c)
        # shift[kw, w_in, w_out] = 1 iff w_in == w_out + kw - pad
        # (taps that would read the zero width-halo are simply dropped)
        w_in = jnp.arange(w_sp)[None, :, None]
        w_out = jnp.arange(w_sp)[None, None, :]
        kw_i = jnp.arange(K)[:, None, None]
        shift = (w_in == (w_out + kw_i - pad)).astype(wt.dtype)      # (K, W, W)
        tmp = jnp.einsum("kpv,hkio->hpivo", shift, wt)               # (K, W, Cin, W, Cout)
        tmp = tmp.reshape(K, w_sp * cin, w_sp, cout)
        # even/odd output interleave: out lane = (w%2)*(W/2*Cout) + (w//2)*Cout + co
        perm_w = jnp.concatenate([jnp.arange(0, w_sp, 2), jnp.arange(1, w_sp, 2)])
        wbd = tmp[:, :, perm_w, :].reshape(K, w_sp * cin, w_sp * cout)
        b_tiled = jnp.tile(b, (w_sp,)).reshape(1, w_sp * cout)
        conv_prep.append((wbd, b_tiled))
        conv_meta.append((h, w_sp, cin, cout, K))
        h, w_sp, c = h // 2, w_sp // 2, cout

    feat = h * w_sp * c
    # kernel flattens in (h, w, c) order; torch flattens NCHW (c, h, w)
    perm = jnp.arange(feat).reshape(c, h, w_sp).transpose(1, 2, 0).reshape(feat)
    ff_prep = []
    ff = list(params["ff"])
    wo, bo = params["ff_out"]
    if ff:
        w0, b0 = ff[0]
        ff_prep.append((w0[perm, :], b0.reshape(1, -1)))
        for (wf, bf) in ff[1:]:
            ff_prep.append((wf, bf.reshape(1, -1)))
        ff_out = (wo.reshape(1, -1), bo.reshape(1, 1))
    else:
        ff_out = (wo[perm, :].reshape(1, -1), bo.reshape(1, 1))

    prep = {"conv": conv_prep, "ff": ff_prep, "ff_out": ff_out}
    meta = {"conv_meta": tuple(conv_meta), "K": K, "pad": pad, "in_shape": (H, W, C)}
    return prep, meta


# ----------------------------------------------------------------------------
# Forward builder: one pallas_call for the whole network
# ----------------------------------------------------------------------------
def build_forward(prep, meta):
    conv_meta = meta["conv_meta"]
    H, W, C = meta["in_shape"]
    pad = meta["pad"]
    Hp = H + 2 * pad
    conv_params = prep["conv"]
    ff_params = prep["ff"]
    wo, bo = prep["ff_out"]
    kernel = _make_fused_kernel(conv_meta, len(ff_params))

    def forward(x_nchw):
        B = x_nchw.shape[0]
        # TODO(synk): fold this transpose + row-pad into the kernel to delete
        #   the last wrapper-side XLA ops (only the width packing is free).
        x = jnp.transpose(x_nchw, (0, 2, 3, 1)).reshape(B, H, W * C)
        x = jnp.pad(x, ((0, 0), (pad, pad), (0, 0)))     # height halo only

        ins = [x]
        in_specs = [pl.BlockSpec((1, Hp, W * C), lambda b: (b, 0, 0))]
        for (wbd, bt) in conv_params:
            ins += [wbd, bt]
            in_specs += [pl.BlockSpec(wbd.shape, lambda b: (0, 0, 0)),
                         pl.BlockSpec(bt.shape, lambda b: (0, 0))]
        for (wf, bf) in ff_params:
            ins += [wf, bf]
            in_specs += [pl.BlockSpec(wf.shape, lambda b: (0, 0)),
                         pl.BlockSpec(bf.shape, lambda b: (0, 0))]
        ins += [wo, bo]
        in_specs += [pl.BlockSpec(wo.shape, lambda b: (0, 0)),
                     pl.BlockSpec(bo.shape, lambda b: (0, 0))]

        out = pl.pallas_call(
            kernel,
            out_shape=jax.ShapeDtypeStruct((B, 1, 1), jnp.float32),
            grid=(B,),
            in_specs=in_specs,
            out_specs=pl.BlockSpec((1, 1, 1), lambda b: (b, 0, 0)),
            compiler_params=pltpu.CompilerParams(
                # one image per TensorCore on v7x; on v5e/v6e this is a 2-step
                # serial loop (~0.35us overhead) which is negligible here.
                dimension_semantics=("parallel",),
            ),
        )(*ins)
        return out.reshape(B, 1)

    return jax.jit(forward)


# ----------------------------------------------------------------------------
# Pure-JAX reference (for correctness check)
# ----------------------------------------------------------------------------
def reference_forward(params, x_nchw):
    hp = jax.lax.Precision.HIGHEST
    x = jnp.transpose(x_nchw, (0, 2, 3, 1))             # NHWC
    for (wt, b) in params["conv"]:
        x = jax.lax.conv_general_dilated(
            x, wt, window_strides=(1, 1), padding="SAME",
            dimension_numbers=("NHWC", "HWIO", "NHWC"), precision=hp)
        x = jnp.maximum(x + b, 0.0)
        x = jax.lax.reduce_window(x, -jnp.inf, jax.lax.max,
                                  (1, 2, 2, 1), (1, 2, 2, 1), "VALID")
    x = jnp.transpose(x, (0, 3, 1, 2)).reshape(x.shape[0], -1)   # torch flatten
    for (wf, bf) in params["ff"]:
        x = _gelu_exact(jnp.dot(x, wf, precision=hp) + bf)
    wo, bo = params["ff_out"]
    x = _gelu_exact(jnp.dot(x, wo, precision=hp) + bo)
    return jax.nn.sigmoid(x)


if __name__ == "__main__":
    key = jax.random.PRNGKey(0)
    B = 2
    input_shape = (16, 16, 4)   # (H, W, C) as in the PyTorch constructor
    n_conv_layers = 2
    n_ff_layers = 2
    kernel_size = 3
    pool_size = 2
    assert pool_size == 2, "this implementation assumes pool_size == 2"

    kx, kp = jax.random.split(key)
    # model is called on B,C,H,W input
    x = jax.random.normal(
        kx, (B, input_shape[2], input_shape[0], input_shape[1]), jnp.float32)
    raw_params = init_discriminator_params(
        kp, input_shape, n_conv_layers, n_ff_layers, kernel_size)
    prepared, meta = prepare_params(raw_params, input_shape, kernel_size)

    fwd = build_forward(prepared, meta)
    out = jax.block_until_ready(fwd(x))
    assert out.shape == (B, 1), out.shape
    assert bool(jnp.all(jnp.isfinite(out)))

    ref = reference_forward(raw_params, x)
    assert bool(jnp.all(jnp.abs(out - ref) < 5e-3)), (out, ref)
    print("KERNEL_OK")
</pallas_src>

<mosaic_0001>
module attributes {stable_mosaic.version = 11 : i64} {
  func.func @kernel(%arg0: i32, %arg1: memref<1x18x64xf32, #tpu.memory_space<vmem>>, %arg2: memref<3x64x128xf32, #tpu.memory_space<vmem>>, %arg3: memref<1x128xf32, #tpu.memory_space<vmem>>, %arg4: memref<3x64x128xf32, #tpu.memory_space<vmem>>, %arg5: memref<1x128xf32, #tpu.memory_space<vmem>>, %arg6: memref<256x256xf32, #tpu.memory_space<vmem>>, %arg7: memref<1x256xf32, #tpu.memory_space<vmem>>, %arg8: memref<1x256xf32, #tpu.memory_space<vmem>>, %arg9: memref<1x1xf32, #tpu.memory_space<vmem>>, %arg10: memref<1x1x1xf32, #tpu.memory_space<vmem>>) attributes {dimension_semantics = [#tpu.dimension_semantics<parallel>], iteration_bounds = array<i64: 2>, scalar_prefetch = 0 : i64, scratch_operands = 0 : i64, tpu.core_type = #tpu.core_type<tc>, window_params = [{transform_indices = @transform_0, window_bounds = array<i64: 1, 18, 64>}, {pipeline_mode = #tpu.pipeline_mode<synchronous>, transform_indices = @transform_1, window_bounds = array<i64: 3, 64, 128>}, {pipeline_mode = #tpu.pipeline_mode<synchronous>, transform_indices = @transform_2, window_bounds = array<i64: 1, 128>}, {pipeline_mode = #tpu.pipeline_mode<synchronous>, transform_indices = @transform_3, window_bounds = array<i64: 3, 64, 128>}, {pipeline_mode = #tpu.pipeline_mode<synchronous>, transform_indices = @transform_4, window_bounds = array<i64: 1, 128>}, {pipeline_mode = #tpu.pipeline_mode<synchronous>, transform_indices = @transform_5, window_bounds = array<i64: 256, 256>}, {pipeline_mode = #tpu.pipeline_mode<synchronous>, transform_indices = @transform_6, window_bounds = array<i64: 1, 256>}, {pipeline_mode = #tpu.pipeline_mode<synchronous>, transform_indices = @transform_7, window_bounds = array<i64: 1, 256>}, {pipeline_mode = #tpu.pipeline_mode<synchronous>, transform_indices = @transform_8, window_bounds = array<i64: 1, 1>}, {transform_indices = @transform_9, window_bounds = array<i64: 1, 1, 1>}]} {
    %c0 = arith.constant 0 : index
    %c0_0 = arith.constant 0 : index
    %c0_1 = arith.constant 0 : index
    %0 = vector.load %arg1[%c0, %c0_0, %c0_1] : memref<1x18x64xf32, #tpu.memory_space<vmem>>, vector<1x18x64xf32>
    %1 = vector.shape_cast %0 : vector<1x18x64xf32> to vector<18x64xf32>
    %2 = vector.extract_strided_slice %1 {offsets = [0, 0], sizes = [16, 64], strides = [1, 1]} : vector<18x64xf32> to vector<16x64xf32>
    %c0_2 = arith.constant 0 : index
    %c0_3 = arith.constant 0 : index
    %c0_4 = arith.constant 0 : index
    %3 = vector.load %arg2[%c0_2, %c0_3, %c0_4] : memref<3x64x128xf32, #tpu.memory_space<vmem>>, vector<1x64x128xf32>
    %4 = vector.shape_cast %3 : vector<1x64x128xf32> to vector<64x128xf32>
    %cst = arith.constant dense<0.000000e+00> : vector<16x128xf32>
    %5 = tpu.matmul %2, %4, %cst {dimension_numbers = #tpu.dot_dimension_numbers<[1], [0], [0], [1], [0, 0, 1, 1], [], []>} : vector<16x64xf32>, vector<64x128xf32>, vector<16x128xf32> -> vector<16x128xf32>
    %6 = vector.extract_strided_slice %1 {offsets = [1, 0], sizes = [16, 64], strides = [1, 1]} : vector<18x64xf32> to vector<16x64xf32>
    %c1 = arith.constant 1 : index
    %c0_5 = arith.constant 0 : index
    %c0_6 = arith.constant 0 : index
    %7 = vector.load %arg2[%c1, %c0_5, %c0_6] : memref<3x64x128xf32, #tpu.memory_space<vmem>>, vector<1x64x128xf32>
    %8 = vector.shape_cast %7 : vector<1x64x128xf32> to vector<64x128xf32>
    %cst_7 = arith.constant dense<0.000000e+00> : vector<16x128xf32>
    %9 = tpu.matmul %6, %8, %cst_7 {dimension_numbers = #tpu.dot_dimension_numbers<[1], [0], [0], [1], [0, 0, 1, 1], [], []>} : vector<16x64xf32>, vector<64x128xf32>, vector<16x128xf32> -> vector<16x128xf32>
    %10 = arith.addf %5, %9 : vector<16x128xf32>
    %11 = vector.extract_strided_slice %1 {offsets = [2, 0], sizes = [16, 64], strides = [1, 1]} : vector<18x64xf32> to vector<16x64xf32>
    %c2 = arith.constant 2 : index
    %c0_8 = arith.constant 0 : index
    %c0_9 = arith.constant 0 : index
    %12 = vector.load %arg2[%c2, %c0_8, %c0_9] : memref<3x64x128xf32, #tpu.memory_space<vmem>>, vector<1x64x128xf32>
    %13 = vector.shape_cast %12 : vector<1x64x128xf32> to vector<64x128xf32>
    %cst_10 = arith.constant dense<0.000000e+00> : vector<16x128xf32>
    %14 = tpu.matmul %11, %13, %cst_10 {dimension_numbers = #tpu.dot_dimension_numbers<[1], [0], [0], [1], [0, 0, 1, 1], [], []>} : vector<16x64xf32>, vector<64x128xf32>, vector<16x128xf32> -> vector<16x128xf32>
    %15 = arith.addf %10, %14 : vector<16x128xf32>
    %c0_11 = arith.constant 0 : index
    %c0_12 = arith.constant 0 : index
    %16 = vector.load %arg3[%c0_11, %c0_12] : memref<1x128xf32, #tpu.memory_space<vmem>>, vector<1x128xf32>
    %17 = vector.broadcast %16 : vector<1x128xf32> to vector<16x128xf32>
    %18 = arith.addf %15, %17 : vector<16x128xf32>
    %cst_13 = arith.constant 0.000000e+00 : f32
    %19 = vector.broadcast %cst_13 : f32 to vector<16x128xf32>
    %20 = arith.maximumf %18, %19 : vector<16x128xf32>
    %21 = vector.extract_strided_slice %20 {offsets = [0, 0], sizes = [1, 128], strides = [1, 1]} : vector<16x128xf32> to vector<1x128xf32>
    %22 = vector.extract_strided_slice %20 {offsets = [1, 0], sizes = [1, 128], strides = [1, 1]} : vector<16x128xf32> to vector<1x128xf32>
    %23 = arith.maximumf %21, %22 : vector<1x128xf32>
    %24 = vector.extract_strided_slice %23 {offsets = [0, 0], sizes = [1, 64], strides = [1, 1]} : vector<1x128xf32> to vector<1x64xf32>
    %25 = vector.extract_strided_slice %23 {offsets = [0, 64], sizes = [1, 64], strides = [1, 1]} : vector<1x128xf32> to vector<1x64xf32>
    %26 = arith.maximumf %24, %25 : vector<1x64xf32>
    %27 = vector.extract_strided_slice %20 {offsets = [2, 0], sizes = [1, 128], strides = [1, 1]} : vector<16x128xf32> to vector<1x128xf32>
    %28 = vector.extract_strided_slice %20 {offsets = [3, 0], sizes = [1, 128], strides = [1, 1]} : vector<16x128xf32> to vector<1x128xf32>
    %29 = arith.maximumf %27, %28 : vector<1x128xf32>
    %30 = vector.extract_strided_slice %29 {offsets = [0, 0], sizes = [1, 64], strides = [1, 1]} : vector<1x128xf32> to vector<1x64xf32>
    %31 = vector.extract_strided_slice %29 {offsets = [0, 64], sizes = [1, 64], strides = [1, 1]} : vector<1x128xf32> to vector<1x64xf32>
    %32 = arith.maximumf %30, %31 : vector<1x64xf32>
    %33 = vector.extract_strided_slice %20 {offsets = [4, 0], sizes = [1, 128], strides = [1, 1]} : vector<16x128xf32> to vector<1x128xf32>
    %34 = vector.extract_strided_slice %20 {offsets = [5, 0], sizes = [1, 128], strides = [1, 1]} : vector<16x128xf32> to vector<1x128xf32>
    %35 = arith.maximumf %33, %34 : vector<1x128xf32>
    %36 = vector.extract_strided_slice %35 {offsets = [0, 0], sizes = [1, 64], strides = [1, 1]} : vector<1x128xf32> to vector<1x64xf32>
    %37 = vector.extract_strided_slice %35 {offsets = [0, 64], sizes = [1, 64], strides = [1, 1]} : vector<1x128xf32> to vector<1x64xf32>
    %38 = arith.maximumf %36, %37 : vector<1x64xf32>
    %39 = vector.extract_strided_slice %20 {offsets = [6, 0], sizes = [1, 128], strides = [1, 1]} : vector<16x128xf32> to vector<1x128xf32>
    %40 = vector.extract_strided_slice %20 {offsets = [7, 0], sizes = [1, 128], strides = [1, 1]} : vector<16x128xf32> to vector<1x128xf32>
    %41 = arith.maximumf %39, %40 : vector<1x128xf32>
    %42 = vector.extract_strided_slice %41 {offsets = [0, 0], sizes = [1, 64], strides = [1, 1]} : vector<1x128xf32> to vector<1x64xf32>
    %43 = vector.extract_strided_slice %41 {offsets = [0, 64], sizes = [1, 64], strides = [1, 1]} : vector<1x128xf32> to vector<1x64xf32>
    %44 = arith.maximumf %42, %43 : vector<1x64xf32>
    %45 = vector.extract_strided_slice %20 {offsets = [8, 0], sizes = [1, 128], strides = [1, 1]} : vector<16x128xf32> to vector<1x128xf32>
    %46 = vector.extract_strided_slice %20 {offsets = [9, 0], sizes = [1, 128], strides = [1, 1]} : vector<16x128xf32> to vector<1x128xf32>
    %47 = arith.maximumf %45, %46 : vector<1x128xf32>
    %48 = vector.extract_strided_slice %47 {offsets = [0, 0], sizes = [1, 64], strides = [1, 1]} : vector<1x128xf32> to vector<1x64xf32>
    %49 = vector.extract_strided_slice %47 {offsets = [0, 64], sizes = [1, 64], strides = [1, 1]} : vector<1x128xf32> to vector<1x64xf32>
    %50 = arith.maximumf %48, %49 : vector<1x64xf32>
    %51 = vector.extract_strided_slice %20 {offsets = [10, 0], sizes = [1, 128], strides = [1, 1]} : vector<16x128xf32> to vector<1x128xf32>
    %52 = vector.extract_strided_slice %20 {offsets = [11, 0], sizes = [1, 128], strides = [1, 1]} : vector<16x128xf32> to vector<1x128xf32>
    %53 = arith.maximumf %51, %52 : vector<1x128xf32>
    %54 = vector.extract_strided_slice %53 {offsets = [0, 0], sizes = [1, 64], strides = [1, 1]} : vector<1x128xf32> to vector<1x64xf32>
    %55 = vector.extract_strided_slice %53 {offsets = [0, 64], sizes = [1, 64], strides = [1, 1]} : vector<1x128xf32> to vector<1x64xf32>
    %56 = arith.maximumf %54, %55 : vector<1x64xf32>
    %57 = vector.extract_strided_slice %20 {offsets = [12, 0], sizes = [1, 128], strides = [1, 1]} : vector<16x128xf32> to vector<1x128xf32>
    %58 = vector.extract_strided_slice %20 {offsets = [13, 0], sizes = [1, 128], strides = [1, 1]} : vector<16x128xf32> to vector<1x128xf32>
    %59 = arith.maximumf %57, %58 : vector<1x128xf32>
    %60 = vector.extract_strided_slice %59 {offsets = [0, 0], sizes = [1, 64], strides = [1, 1]} : vector<1x128xf32> to vector<1x64xf32>
    %61 = vector.extract_strided_slice %59 {offsets = [0, 64], sizes = [1, 64], strides = [1, 1]} : vector<1x128xf32> to vector<1x64xf32>
    %62 = arith.maximumf %60, %61 : vector<1x64xf32>
    %63 = vector.extract_strided_slice %20 {offsets = [14, 0], sizes = [1, 128], strides = [1, 1]} : vector<16x128xf32> to vector<1x128xf32>
    %64 = vector.extract_strided_slice %20 {offsets = [15, 0], sizes = [1, 128], strides = [1, 1]} : vector<16x128xf32> to vector<1x128xf32>
    %65 = arith.maximumf %63, %64 : vector<1x128xf32>
    %66 = vector.extract_strided_slice %65 {offsets = [0, 0], sizes = [1, 64], strides = [1, 1]} : vector<1x128xf32> to vector<1x64xf32>
    %67 = vector.extract_strided_slice %65 {offsets = [0, 64], sizes = [1, 64], strides = [1, 1]} : vector<1x128xf32> to vector<1x64xf32>
    %68 = arith.maximumf %66, %67 : vector<1x64xf32>
    %cst_14 = arith.constant 0.000000e+00 : f32
    %69 = vector.broadcast %cst_14 : f32 to vector<1x64xf32>
    %70 = tpu.concatenate %69, %26, %32, %38, %44, %50, %56, %62, %68, %69 in 0 : vector<1x64xf32>, vector<1x64xf32>, vector<1x64xf32>, vector<1x64xf32>, vector<1x64xf32>, vector<1x64xf32>, vector<1x64xf32>, vector<1x64xf32>, vector<1x64xf32>, vector<1x64xf32> -> vector<10x64xf32>
    %71 = vector.extract_strided_slice %70 {offsets = [0, 0], sizes = [8, 64], strides = [1, 1]} : vector<10x64xf32> to vector<8x64xf32>
    %c0_15 = arith.constant 0 : index
    %c0_16 = arith.constant 0 : index
    %c0_17 = arith.constant 0 : index
    %72 = vector.load %arg4[%c0_15, %c0_16, %c0_17] : memref<3x64x128xf32, #tpu.memory_space<vmem>>, vector<1x64x128xf32>
    %73 = vector.shape_cast %72 : vector<1x64x128xf32> to vector<64x128xf32>
    %cst_18 = arith.constant dense<0.000000e+00> : vector<8x128xf32>
    %74 = tpu.matmul %71, %73, %cst_18 {dimension_numbers = #tpu.dot_dimension_numbers<[1], [0], [0], [1], [0, 0, 1, 1], [], []>} : vector<8x64xf32>, vector<64x128xf32>, vector<8x128xf32> -> vector<8x128xf32>
    %75 = vector.extract_strided_slice %70 {offsets = [1, 0], sizes = [8, 64], strides = [1, 1]} : vector<10x64xf32> to vector<8x64xf32>
    %c1_19 = arith.constant 1 : index
    %c0_20 = arith.constant 0 : index
    %c0_21 = arith.constant 0 : index
    %76 = vector.load %arg4[%c1_19, %c0_20, %c0_21] : memref<3x64x128xf32, #tpu.memory_space<vmem>>, vector<1x64x128xf32>
    %77 = vector.shape_cast %76 : vector<1x64x128xf32> to vector<64x128xf32>
    %cst_22 = arith.constant dense<0.000000e+00> : vector<8x128xf32>
    %78 = tpu.matmul %75, %77, %cst_22 {dimension_numbers = #tpu.dot_dimension_numbers<[1], [0], [0], [1], [0, 0, 1, 1], [], []>} : vector<8x64xf32>, vector<64x128xf32>, vector<8x128xf32> -> vector<8x128xf32>
    %79 = arith.addf %74, %78 : vector<8x128xf32>
    %80 = vector.extract_strided_slice %70 {offsets = [2, 0], sizes = [8, 64], strides = [1, 1]} : vector<10x64xf32> to vector<8x64xf32>
    %c2_23 = arith.constant 2 : index
    %c0_24 = arith.constant 0 : index
    %c0_25 = arith.constant 0 : index
    %81 = vector.load %arg4[%c2_23, %c0_24, %c0_25] : memref<3x64x128xf32, #tpu.memory_space<vmem>>, vector<1x64x128xf32>
    %82 = vector.shape_cast %81 : vector<1x64x128xf32> to vector<64x128xf32>
    %cst_26 = arith.constant dense<0.000000e+00> : vector<8x128xf32>
    %83 = tpu.matmul %80, %82, %cst_26 {dimension_numbers = #tpu.dot_dimension_numbers<[1], [0], [0], [1], [0, 0, 1, 1], [], []>} : vector<8x64xf32>, vector<64x128xf32>, vector<8x128xf32> -> vector<8x128xf32>
    %84 = arith.addf %79, %83 : vector<8x128xf32>
    %c0_27 = arith.constant 0 : index
    %c0_28 = arith.constant 0 : index
    %85 = vector.load %arg5[%c0_27, %c0_28] : memref<1x128xf32, #tpu.memory_space<vmem>>, vector<1x128xf32>
    %86 = vector.broadcast %85 : vector<1x128xf32> to vector<8x128xf32>
    %87 = arith.addf %84, %86 : vector<8x128xf32>
    %cst_29 = arith.constant 0.000000e+00 : f32
    %88 = vector.broadcast %cst_29 : f32 to vector<8x128xf32>
    %89 = arith.maximumf %87, %88 : vector<8x128xf32>
    %90 = vector.extract_strided_slice %89 {offsets = [0, 0], sizes = [1, 128], strides = [1, 1]} : vector<8x128xf32> to vector<1x128xf32>
    %91 = vector.extract_strided_slice %89 {offsets = [1, 0], sizes = [1, 128], strides = [1, 1]} : vector<8x128xf32> to vector<1x128xf32>
    %92 = arith.maximumf %90, %91 : vector<1x128xf32>
    %93 = vector.extract_strided_slice %92 {offsets = [0, 0], sizes = [1, 64], strides = [1, 1]} : vector<1x128xf32> to vector<1x64xf32>
    %94 = vector.extract_strided_slice %92 {offsets = [0, 64], sizes = [1, 64], strides = [1, 1]} : vector<1x128xf32> to vector<1x64xf32>
    %95 = arith.maximumf %93, %94 : vector<1x64xf32>
    %96 = vector.extract_strided_slice %89 {offsets = [2, 0], sizes = [1, 128], strides = [1, 1]} : vector<8x128xf32> to vector<1x128xf32>
    %97 = vector.extract_strided_slice %89 {offsets = [3, 0], sizes = [1, 128], strides = [1, 1]} : vector<8x128xf32> to vector<1x128xf32>
    %98 = arith.maximumf %96, %97 : vector<1x128xf32>
    %99 = vector.extract_strided_slice %98 {offsets = [0, 0], sizes = [1, 64], strides = [1, 1]} : vector<1x128xf32> to vector<1x64xf32>
    %100 = vector.extract_strided_slice %98 {offsets = [0, 64], sizes = [1, 64], strides = [1, 1]} : vector<1x128xf32> to vector<1x64xf32>
    %101 = arith.maximumf %99, %100 : vector<1x64xf32>
    %102 = vector.extract_strided_slice %89 {offsets = [4, 0], sizes = [1, 128], strides = [1, 1]} : vector<8x128xf32> to vector<1x128xf32>
    %103 = vector.extract_strided_slice %89 {offsets = [5, 0], sizes = [1, 128], strides = [1, 1]} : vector<8x128xf32> to vector<1x128xf32>
    %104 = arith.maximumf %102, %103 : vector<1x128xf32>
    %105 = vector.extract_strided_slice %104 {offsets = [0, 0], sizes = [1, 64], strides = [1, 1]} : vector<1x128xf32> to vector<1x64xf32>
    %106 = vector.extract_strided_slice %104 {offsets = [0, 64], sizes = [1, 64], strides = [1, 1]} : vector<1x128xf32> to vector<1x64xf32>
    %107 = arith.maximumf %105, %106 : vector<1x64xf32>
    %108 = vector.extract_strided_slice %89 {offsets = [6, 0], sizes = [1, 128], strides = [1, 1]} : vector<8x128xf32> to vector<1x128xf32>
    %109 = vector.extract_strided_slice %89 {offsets = [7, 0], sizes = [1, 128], strides = [1, 1]} : vector<8x128xf32> to vector<1x128xf32>
    %110 = arith.maximumf %108, %109 : vector<1x128xf32>
    %111 = vector.extract_strided_slice %110 {offsets = [0, 0], sizes = [1, 64], strides = [1, 1]} : vector<1x128xf32> to vector<1x64xf32>
    %112 = vector.extract_strided_slice %110 {offsets = [0, 64], sizes = [1, 64], strides = [1, 1]} : vector<1x128xf32> to vector<1x64xf32>
    %113 = arith.maximumf %111, %112 : vector<1x64xf32>
    %114 = tpu.concatenate %95, %101, %107, %113 in 1 : vector<1x64xf32>, vector<1x64xf32>, vector<1x64xf32>, vector<1x64xf32> -> vector<1x256xf32>
    %c0_30 = arith.constant 0 : index
    %c0_31 = arith.constant 0 : index
    %115 = vector.load %arg6[%c0_30, %c0_31] : memref<256x256xf32, #tpu.memory_space<vmem>>, vector<256x256xf32>
    %cst_32 = arith.constant dense<0.000000e+00> : vector<1x256xf32>
    %116 = tpu.matmul %114, %115, %cst_32 {dimension_numbers = #tpu.dot_dimension_numbers<[1], [0], [0], [1], [0, 0, 1, 1], [], []>} : vector<1x256xf32>, vector<256x256xf32>, vector<1x256xf32> -> vector<1x256xf32>
    %c0_33 = arith.constant 0 : index
    %c0_34 = arith.constant 0 : index
    %117 = vector.load %arg7[%c0_33, %c0_34] : memref<1x256xf32, #tpu.memory_space<vmem>>, vector<1x256xf32>
    %118 = arith.addf %116, %117 : vector<1x256xf32>
    %cst_35 = arith.constant 5.000000e-01 : f32
    %119 = vector.broadcast %cst_35 : f32 to vector<1x256xf32>
    %120 = arith.mulf %119, %118 : vector<1x256xf32>
    %cst_36 = arith.constant 0.707106769 : f32
    %121 = vector.broadcast %cst_36 : f32 to vector<1x256xf32>
    %122 = arith.mulf %118, %121 : vector<1x256xf32>
    %123 = math.erf %122 : vector<1x256xf32>
    %cst_37 = arith.constant 1.000000e+00 : f32
    %124 = vector.broadcast %cst_37 : f32 to vector<1x256xf32>
    %125 = arith.addf %124, %123 : vector<1x256xf32>
    %126 = arith.mulf %120, %125 : vector<1x256xf32>
    %c0_38 = arith.constant 0 : index
    %c0_39 = arith.constant 0 : index
    %127 = vector.load %arg8[%c0_38, %c0_39] : memref<1x256xf32, #tpu.memory_space<vmem>>, vector<1x256xf32>
    %128 = arith.mulf %126, %127 : vector<1x256xf32>
    %cst_40 = arith.constant dense<0.000000e+00> : vector<1xf32>
    %129 = vector.multi_reduction <add>, %128, %cst_40 [1] : vector<1x256xf32> to vector<1xf32>
    %130 = vector.shape_cast %129 : vector<1xf32> to vector<1x1xf32>
    %c0_41 = arith.constant 0 : index
    %c0_42 = arith.constant 0 : index
    %131 = vector.load %arg9[%c0_41, %c0_42] : memref<1x1xf32, #tpu.memory_space<vmem>>, vector<1x1xf32>
    %132 = arith.addf %130, %131 : vector<1x1xf32>
    %cst_43 = arith.constant 5.000000e-01 : f32
    %133 = vector.broadcast %cst_43 : f32 to vector<1x1xf32>
    %134 = arith.mulf %133, %132 : vector<1x1xf32>
    %cst_44 = arith.constant 0.707106769 : f32
    %135 = vector.broadcast %cst_44 : f32 to vector<1x1xf32>
    %136 = arith.mulf %132, %135 : vector<1x1xf32>
    %137 = math.erf %136 : vector<1x1xf32>
    %cst_45 = arith.constant 1.000000e+00 : f32
    %138 = vector.broadcast %cst_45 : f32 to vector<1x1xf32>
    %139 = arith.addf %138, %137 : vector<1x1xf32>
    %140 = arith.mulf %134, %139 : vector<1x1xf32>
    %141 = arith.negf %140 : vector<1x1xf32>
    %142 = math.exp %141 : vector<1x1xf32>
    %cst_46 = arith.constant 1.000000e+00 : f32
    %143 = vector.broadcast %cst_46 : f32 to vector<1x1xf32>
    %144 = arith.addf %143, %142 : vector<1x1xf32>
    %145 = arith.divf %143, %144 : vector<1x1xf32>
    %c0_47 = arith.constant 0 : index
    %c0_48 = arith.constant 0 : index
    %c0_49 = arith.constant 0 : index
    %146 = vector.load %arg10[%c0_47, %c0_48, %c0_49] : memref<1x1x1xf32, #tpu.memory_space<vmem>>, vector<1x1x1xf32>
    %147 = vector.shape_cast %146 : vector<1x1x1xf32> to vector<1x1xf32>
    %148 = vector.shape_cast %145 : vector<1x1xf32> to vector<1x1x1xf32>
    tpu.vector_store %arg10[%c0_47, %c0_48, %c0_49], %148 {strides = array<i32>} : memref<1x1x1xf32, #tpu.memory_space<vmem>>, vector<1x1x1xf32>,
    return
  }
  func.func @transform_0(%arg0: i32) -> (i32, i32, i32) {
    %c0_i32 = arith.constant 0 : i32
    %c0_i32_0 = arith.constant 0 : i32
    %c0_i32_1 = arith.constant 0 : i32
    return %arg0, %c0_i32, %c0_i32_0 : i32, i32, i32
  }
  func.func @transform_1(%arg0: i32) -> (i32, i32, i32) {
    %c0_i32 = arith.constant 0 : i32
    %c0_i32_0 = arith.constant 0 : i32
    %c0_i32_1 = arith.constant 0 : i32
    %c0_i32_2 = arith.constant 0 : i32
    return %c0_i32, %c0_i32_0, %c0_i32_1 : i32, i32, i32
  }
  func.func @transform_2(%arg0: i32) -> (i32, i32) {
    %c0_i32 = arith.constant 0 : i32
    %c0_i32_0 = arith.constant 0 : i32
    %c0_i32_1 = arith.constant 0 : i32
    return %c0_i32, %c0_i32_0 : i32, i32
  }
  func.func @transform_3(%arg0: i32) -> (i32, i32, i32) {
    %c0_i32 = arith.constant 0 : i32
    %c0_i32_0 = arith.constant 0 : i32
    %c0_i32_1 = arith.constant 0 : i32
    %c0_i32_2 = arith.constant 0 : i32
    return %c0_i32, %c0_i32_0, %c0_i32_1 : i32, i32, i32
  }
  func.func @transform_4(%arg0: i32) -> (i32, i32) {
    %c0_i32 = arith.constant 0 : i32
    %c0_i32_0 = arith.constant 0 : i32
    %c0_i32_1 = arith.constant 0 : i32
    return %c0_i32, %c0_i32_0 : i32, i32
  }
  func.func @transform_5(%arg0: i32) -> (i32, i32) {
    %c0_i32 = arith.constant 0 : i32
    %c0_i32_0 = arith.constant 0 : i32
    %c0_i32_1 = arith.constant 0 : i32
    return %c0_i32, %c0_i32_0 : i32, i32
  }
  func.func @transform_6(%arg0: i32) -> (i32, i32) {
    %c0_i32 = arith.constant 0 : i32
    %c0_i32_0 = arith.constant 0 : i32
    %c0_i32_1 = arith.constant 0 : i32
    return %c0_i32, %c0_i32_0 : i32, i32
  }
  func.func @transform_7(%arg0: i32) -> (i32, i32) {
    %c0_i32 = arith.constant 0 : i32
    %c0_i32_0 = arith.constant 0 : i32
    %c0_i32_1 = arith.constant 0 : i32
    return %c0_i32, %c0_i32_0 : i32, i32
  }
  func.func @transform_8(%arg0: i32) -> (i32, i32) {
    %c0_i32 = arith.constant 0 : i32
    %c0_i32_0 = arith.constant 0 : i32
    %c0_i32_1 = arith.constant 0 : i32
    return %c0_i32, %c0_i32_0 : i32, i32
  }
  func.func @transform_9(%arg0: i32) -> (i32, i32, i32) {
    %c0_i32 = arith.constant 0 : i32
    %c0_i32_0 = arith.constant 0 : i32
    %c0_i32_1 = arith.constant 0 : i32
    return %arg0, %c0_i32, %c0_i32_0 : i32, i32, i32
  }
}

</mosaic_0001>

<bundles_post_ra>
// kernel: forward.1
= control target key start
LH: loop header
LB: loop body
LE: loop exit
PB: predicated region body
PF: predicated region fallthrough
CT: control target
= control target key end

     0   :  { %s1843_s0 = inlined_call_operand.vmem [shape: f32[2,18,64], index: 0, kind: input, shape index: {}]   ;;  %s1844_s1 = inlined_call_operand.vmem [shape: f32[3,64,128], index: 1, kind: input, shape index: {}]   ;;  %s1845_s2 = inlined_call_operand.vmem [shape: f32[1,128], index: 2, kind: input, shape index: {}]   ;;  %s1846_s3 = inlined_call_operand.vmem [shape: f32[3,64,128], index: 3, kind: input, shape index: {}]   ;;  %s1847_s4 = inlined_call_operand.vmem [shape: f32[1,128], index: 4, kind: input, shape index: {}]   ;;  %s1848_s5 = inlined_call_operand.hbm [shape: f32[256,256], index: 5, kind: input, shape index: {}]   ;;  %s1849_s6 = inlined_call_operand.vmem [shape: f32[1,256], index: 6, kind: input, shape index: {}]   ;;  %s1850_s7 = inlined_call_operand.vmem [shape: f32[1,256], index: 7, kind: input, shape index: {}]   ;;  %s1851_s8 = inlined_call_operand.<no memory space> [shape: f32[1,1], index: 8, kind: input, shape index: {}]   ;;  %s1852_s9 = inlined_call_operand.vmem [shape: f32[2,1,1], index: 9, kind: output, shape index: {}]  }
   0x1   :  { %v14_v0 = vstv %s1851_s8 }
   0x2   :  { %15 = vst [vmem:[#allocation2] sm:$0x1] %v14_v0 }
   0x3   :  { %16 = vsyncpa [#allocation4], 0  ;;  %s1582_s11 = smov 0  }
   0x4 LB: > { %s1220_s12 = sadd.s32 4294967295, %s1521_s11   ;;  %p1222_p0 = scmp.ge.s32.totalorder %s1521_s11, 1  ;;  %s1521_s11 = sphi %s1582_s11, %s22_s11  }
   0x5   : > { %p247_p1 = scmp.lt.s32.totalorder %s1521_s11, 3  ;;  %s1523_s13 = smov [#allocation3]  }
   0x6   : > { %s271_s14 = sshll.u32 %s1523_s13, 4  ;;  %p1454_p3 = scmp.eq.s32.totalorder %s1220_s12, 0  ;;  %s272_s14 = int_to_ptr.vmem [resolvable:$true] %s271_s14 }
   0x7   : > { %p1590_p2 = pnand %p1222_p0, %p247_p1  ;;  %s1496_s8 = scalar_lea.vmem %s272_s14, 8192 }
   0x8   : > { %p1497_p7 = scmp.ne.s32.totalorder %s272_s14, %s1496_s8  ;;  %p1504_p10 = scmp.lt.s32.totalorder %s272_s14, %s272_s14 }
   0x9   : > { %p1450_p4 = pneg %p1590_p2  ;;  %p1505_p11 = scmp.lt.s32.totalorder %s1496_s8, %s1496_s8 }
   0xb   : > { %p1451_p5 = pnand %p1454_p3, %p1450_p4  ;;  %p1506_p12 = por %p1505_p11, %p1504_p10 }
   0xd   : > { %p1487_p6 = pneg %p1451_p5 }
   0xf   : > { %p1499_p8 = pnand %p1497_p7, %p1487_p6 }
  0x11   : > { %p1500_p9 = pneg %p1499_p8 }
  0x13   : > { %p1507_p13 = pnand %p1506_p12, %p1500_p9 }
  0x15   : > { %1510 = shalt.err (!%p1507_p13)
}
  0x16   : > { %s1524_s16 = smov 256   ;;  %s1525_s17 = smov 16  }
  0x17   : > { %1453 = dma.hbm_to_vmem [thread:$0]  (!%p1451_p5), %s1848_s5, 8192, %s272_s14, [#allocation4], %s1524_s16, %s1524_s16, %s1525_s17  }
  0x18   : > { %304 = sbr.rel (%p1590_p2) target bundleno = 1287 (0x507), region = 56 }
  0x1d   : > { %1516 = dma.done.wait (%p1454_p3), [#allocation4], 8192  }
  0x1e   : > { %1518 = vsyncadd (%p1454_p3), [#allocation4], 4294959104  ;;  %p338_p0 = scmp.lt.s32.totalorder %s1220_s12, 1  ;;  %v1235_v1 = vld [vmem:[%s1844_s1 + $0x78] sm:$0xff]  ;;  %v1234_v2 = vld [vmem:[%s1844_s1 + $0x70] sm:$0xff]  ;;  %vm369_vm0 = vcmask 1046528  }
  0x1f   : > { %1331 = vmatprep.subr.mxu1 %v1235_v1  ;;  %v1233_v3 = vld [vmem:[%s1844_s1 + $0x68] sm:$0xff]  ;;  %v1232_v7 = vld [vmem:[%s1844_s1 + $0x60] sm:$0xff]  ;;  %vm375_vm1 = vcmask 523264   ;;  %v1231_v9 = vld [vmem:[%s1844_s1 + $0x58] sm:$0xff]  ;;  %vm543_vm2 = vcmask 1045504   ;;  %v1526_v40 = vmov 0.0  }
  0x20   : > { %s1855_s12 = smov (!%p338_p0, %s1220_s12), 1  ;;  %1332 = vmatpush3.msra.mxu1 %v1235_v1  ;;  %v1230_v12 = vld [vmem:[%s1844_s1 + $0x50] sm:$0xff]  ;;  %v1229_v13 = vld [vmem:[%s1844_s1 + $0x48] sm:$0xff]  ;;  %v1228_v15 = vld [vmem:[%s1844_s1 + $0x40] sm:$0xff]  ;;  %1407 = vmatprep.subr.mxu0 %v1526_v40  ;;  %vm1527_vm3 = vmmov 0   ;;  %s1528_s26 = smov 64  }
  0x21   : > { %s1445_s20 = smul.u32 24, %s1855_s12  ;;  %1333 = vmatprep.subr.mxu1 %v1234_v2  ;;  %v356_v17 = vld [vmem:[%s1844_s1 + $0x38] sm:$0xff]  ;;  %v355_v18 = vld [vmem:[%s1844_s1 + $0x30] sm:$0xff]  ;;  %v354_v19 = vld [vmem:[%s1844_s1 + $0x28] sm:$0xff]  ;;  %1423 = vmatprep.mubr.msk.f32.mxu0 %vm1527_vm3, %v1526_v40  ;;  %vm675_vm4 = vcmask 1040384   ;;  %vm677_vm5 = vcmask 1041408   ;;  %s345_s10 = scalar_lea.vmem %s1852_s9, %s1855_s12 }
  0x22   : > { %1334 = vmatpush3.msra.mxu1 %v1234_v2  ;;  %v353_v20 = vld [vmem:[%s1844_s1 + $0x20] sm:$0xff]  ;;  %v352_v21 = vld [vmem:[%s1844_s1 + $0x18] sm:$0xff]  ;;  %v351_v22 = vld [vmem:[%s1844_s1 + $0x10] sm:$0xff]  ;;  %vm679_vm6 = vcmask 1042432   ;;  %vm681_vm7 = vcmask 1043456   ;;  %vm683_vm8 = vcmask 1044480  }
  0x23   : > { %s342_s23 = scalar_lea.vmem %s1843_s0, %s1445_s20  ;;  %1335 = vmatprep.subr.mxu1 %v1233_v3  ;;  %v350_v23 = vld [vmem:[%s1844_s1 + $0x8] sm:$0xff]  ;;  %v349_v26 = vld [vmem:[%s1844_s1] sm:$0xff]  ;;  %v1247_v27 = vld [vmem:[%s1844_s1 + $0xb8] sm:$0xff]  ;;  %vm1159_vm9 = vcmask 0  }
  0x24   : > { %v346_v4 = vld [vmem:[%s342_s23] sm:$0xff]  ;;  %v1619_v5 = vld [vmem:[%s342_s23 + $0x8] sm:$0xff]  ;;  %1336 = vmatpush3.msra.mxu1 %v1233_v3  ;;  %v1630_v11 = vld [vmem:[%s342_s23 + $0x10] sm:$0x3] }
  0x25   : > { %v370_v6 = vrot.slane %v346_v4, 1  ;;  %v371_v8 = vrot.slane %v1619_v5, 1  ;;  %1337 = vmatprep.subr.mxu1 %v1232_v7  ;;  %v373_v14 = vrot.slane %v1630_v11, 1  ;;  %v544_v24 = vrot.slane %v346_v4, 2  ;;  %v1246_v29 = vld [vmem:[%s1844_s1 + $0xb0] sm:$0xff]  ;;  %v1245_v30 = vld [vmem:[%s1844_s1 + $0xa8] sm:$0xff] }
  0x26   : > { %1338 = vmatpush3.msra.mxu1 %v1232_v7  ;;  %v545_v25 = vrot.slane %v1619_v5, 2  ;;  %v1244_v31 = vld [vmem:[%s1844_s1 + $0xa0] sm:$0xff]  ;;  %v1243_v32 = vld [vmem:[%s1844_s1 + $0x98] sm:$0xff]  ;;  %v1242_v33 = vld [vmem:[%s1844_s1 + $0x90] sm:$0xff]  ;;  %v547_v34 = vrot.slane %v1630_v11, 2 }
  0x27   : > { %v372_v10 = vsel %vm369_vm0, %v370_v6, %v371_v8  ;;  %1339 = vmatprep.subr.mxu1 %v1231_v9  ;;  %v374_v16 = vsel %vm369_vm0, %v371_v8, %v373_v14  ;;  %v1241_v35 = vld [vmem:[%s1844_s1 + $0x88] sm:$0xff]  ;;  %v1240_v36 = vld [vmem:[%s1844_s1 + $0x80] sm:$0xff]  ;;  %v695_v38 = vld [vmem:[%s1846_s3 + $0x38] sm:$0xff] }
  0x28   : > { %1347 = vmatprep.mubr.msk.f32.mxu1 %vm375_vm1, %v372_v10  ;;  %1340 = vmatpush3.msra.mxu1 %v1231_v9  ;;  %v546_v28 = vsel %vm543_vm2, %v544_v24, %v545_v25  ;;  %v548_v37 = vsel %vm543_vm2, %v545_v25, %v547_v34  ;;  %v1258_v39 = vld [vmem:[%s1846_s3 + $0x78] sm:$0xff]  ;;  %v694_v41 = vld [vmem:[%s1846_s3 + $0x30] sm:$0xff]  ;;  %v693_v48 = vld [vmem:[%s1846_s3 + $0x28] sm:$0xff] }
  0x29   : > { %1341 = vmatprep.subr.mxu1 %v1230_v12  ;;  %1408 = vmatpush3.msra.mxu0 %v695_v38  ;;  %v1257_v47 = vld [vmem:[%s1846_s3 + $0x70] sm:$0xff]  ;;  %v1250_v50 = vld [vmem:[%s1845_s2] ss:$0 sm:$0xff]  ;;  %v1256_v53 = vld [vmem:[%s1846_s3 + $0x68] sm:$0xff] }
  0x2a   : > { %1342 = vmatpush3.msra.mxu1 %v1230_v12  ;;  %1409 = vmatprep.subr.mxu0 %v1526_v40  ;;  %v692_v54 = vld [vmem:[%s1846_s3 + $0x20] sm:$0xff]  ;;  %v691_v59 = vld [vmem:[%s1846_s3 + $0x18] sm:$0xff]  ;;  %v690_v62 = vld [vmem:[%s1846_s3 + $0x10] sm:$0xff] }
  0x2b   : > { %1343 = vmatprep.subr.mxu1 %v1229_v13  ;;  %1410 = vmatpush3.msra.mxu0 %v694_v41  ;;  %v1255_v58 = vld [vmem:[%s1846_s3 + $0x60] sm:$0xff]  ;;  %v1254_v61 = vld [vmem:[%s1846_s3 + $0x58] sm:$0xff]  ;;  %v1253_v1 = vld [vmem:[%s1846_s3 + $0x50] sm:$0xff] }
  0x2c   : > { %1344 = vmatpush3.msra.mxu1 %v1229_v13  ;;  %1411 = vmatprep.subr.mxu0 %v1526_v40  ;;  %v689_v2 = vld [vmem:[%s1846_s3 + $0x8] sm:$0xff]  ;;  %v1251_v8 = vld [vmem:[%s1846_s3 + $0x40] sm:$0xff] }
  0x2d   : > { %1345 = vmatprep.subr.mxu1 %v1228_v15  ;;  %1412 = vmatpush3.msra.mxu0 %v693_v48  ;;  %v1252_v3 = vld [vmem:[%s1846_s3 + $0x48] sm:$0xff]  ;;  %v1261_v41 = vld [vmem:[%s1846_s3 + $0x80] sm:$0xff] }
  0x2e   : > { %1346 = vmatpush3.msra.mxu1 %v1228_v15  ;;  %1413 = vmatprep.subr.mxu0 %v1526_v40  ;;  %v1266_v34 = vld [vmem:[%s1846_s3 + $0xa8] sm:$0xff] }
  0x2f   : > { %1348 = vmatmul.mubr.msk.f32.vlgmr.msra.gmra.mxu1 %vm375_vm1, %v374_v16  ;;  %1350 = vmatprep.subr.mxu1 %v356_v17  ;;  %v1262_v38 = vld [vmem:[%s1846_s3 + $0x88] sm:$0xff] }
  0x30   : > { %1351 = vmatpush3.msra.mxu1 %v356_v17  ;;  %1366 = vmatprep.mubr.msk.f32.mxu1 %vm375_vm1, %v346_v4  ;;  %v688_v4 = vld [vmem:[%s1846_s3] sm:$0xff] }
  0x31   : > { %1352 = vmatprep.subr.mxu1 %v355_v18  ;;  %1414 = vmatpush3.msra.mxu0 %v692_v54  ;;  %v1001_v54 = vld [vmem:[#allocation3 + $0xf8] sm:$0xff] }
  0x32   : > { %1353 = vmatpush3.msra.mxu1 %v355_v18  ;;  %1415 = vmatprep.subr.mxu0 %v1526_v40 }
  0x33   : > { %1354 = vmatprep.subr.mxu1 %v354_v19  ;;  %1416 = vmatpush3.msra.mxu0 %v691_v59 }
  0x34   : > { %1355 = vmatpush3.msra.mxu1 %v354_v19  ;;  %1417 = vmatprep.subr.mxu0 %v1526_v40 }
  0x35   : > { %1356 = vmatprep.subr.mxu1 %v353_v20  ;;  %1418 = vmatpush3.msra.mxu0 %v690_v62 }
  0x36   : > { %1357 = vmatpush3.msra.mxu1 %v353_v20  ;;  %1419 = vmatprep.subr.mxu0 %v1526_v40 }
  0x37   : > { %1358 = vmatprep.subr.mxu1 %v352_v21  ;;  %1420 = vmatpush3.msra.mxu0 %v689_v2  ;;  %v991_v2 = vld [vmem:[#allocation3 + $0xa8] sm:$0xff] }
  0x38   : > { %1359 = vmatpush3.msra.mxu1 %v352_v21  ;;  %1421 = vmatprep.subr.mxu0 %v1526_v40 }
  0x39   : > { %1360 = vmatprep.subr.mxu1 %v351_v22  ;;  %1422 = vmatpush3.msra.mxu0 %v688_v4  ;;  %v989_v4 = vld [vmem:[#allocation3 + $0x98] sm:$0xff] }
  0x3a   : > { %1361 = vmatpush3.msra.mxu1 %v351_v22  ;;  %1046 = vmatprep.subr.mxu0 %v1001_v54  ;;  %v1004_v54 = vld [vmem:[#allocation3 + $0x110] sm:$0xff] }
  0x3b   : > { %1362 = vmatprep.subr.mxu1 %v350_v23 }
  0x3c   : > { %1363 = vmatpush3.msra.mxu1 %v350_v23 }
  0x3d   : > { %1364 = vmatprep.subr.mxu1 %v349_v26 }
  0x3e   : > { %1365 = vmatpush3.msra.mxu1 %v349_v26 }
  0x3f   : > { %1367 = vmatmul.mubr.msk.f32.vlgmr.msra.gmra.mxu1 %vm375_vm1, %v1619_v5  ;;  %1369 = vmatprep.subr.mxu1 %v1247_v27 }
  0x40   : > { %1370 = vmatpush3.msra.mxu1 %v1247_v27  ;;  %1385 = vmatprep.mubr.msk.f32.mxu1 %vm375_vm1, %v546_v28 }
  0x41   : > { %1371 = vmatprep.subr.mxu1 %v1246_v29 }
  0x42   : > { %1372 = vmatpush3.msra.mxu1 %v1246_v29 }
  0x43   : > { %1373 = vmatprep.subr.mxu1 %v1245_v30 }
  0x44   : > { %1374 = vmatpush3.msra.mxu1 %v1245_v30 }
  0x45   : > { %1375 = vmatprep.subr.mxu1 %v1244_v31 }
  0x46   : > { %1376 = vmatpush3.msra.mxu1 %v1244_v31  ;;  %v1268_v31 = vld [vmem:[%s1846_s3 + $0xb8] sm:$0xff] }
  0x47   : > { %1377 = vmatprep.subr.mxu1 %v1243_v32 }
  0x48   : > { %1378 = vmatpush3.msra.mxu1 %v1243_v32 }
  0x49   : > { %1379 = vmatprep.subr.mxu1 %v1242_v33 }
  0x4a   : > { %1380 = vmatpush3.msra.mxu1 %v1242_v33  ;;  %v1267_v33 = vld [vmem:[%s1846_s3 + $0xb0] sm:$0xff] }
  0x4b   : > { %1381 = vmatprep.subr.mxu1 %v1241_v35 }
  0x4c   : > { %1382 = vmatpush3.msra.mxu1 %v1241_v35  ;;  %v1265_v35 = vld [vmem:[%s1846_s3 + $0xa0] sm:$0xff] }
  0x4d   : > { %1383 = vmatprep.subr.mxu1 %v1240_v36 }
  0x4e   : > { %1384 = vmatpush3.msra.mxu1 %v1240_v36  ;;  %v1264_v36 = vld [vmem:[%s1846_s3 + $0x98] sm:$0xff] }
  0x4f   : > { %1386 = vmatmul.mubr.msk.f32.vlgmr.msra.gmra.mxu1 %vm375_vm1, %v548_v37  ;;  %1388 = vmatprep.subr.mxu1 %v1526_v40  ;;  %v1263_v37 = vld [vmem:[%s1846_s3 + $0x90] sm:$0xff] }
  0x50   : > { %1389 = vmatpush3.msra.mxu1 %v1258_v39  ;;  %1404 = vmatprep.mubr.msk.f32.mxu1 %vm1527_vm3, %v1526_v40 }
  0x51   : > { %1390 = vmatprep.subr.mxu1 %v1526_v40 }
  0x52   : > { %1391 = vmatpush3.msra.mxu1 %v1257_v47 }
  0x53   : > { %1392 = vmatprep.subr.mxu1 %v1526_v40 }
  0x54   : > { %1393 = vmatpush3.msra.mxu1 %v1256_v53 }
  0x55   : > { %1394 = vmatprep.subr.mxu1 %v1526_v40 }
  0x56   : > { %1395 = vmatpush3.msra.mxu1 %v1255_v58  ;;  %v997_v58 = vld [vmem:[#allocation3 + $0xd8] sm:$0xff] }
  0x57   : > { %1396 = vmatprep.subr.mxu1 %v1526_v40 }
  0x58   : > { %1397 = vmatpush3.msra.mxu1 %v1254_v61  ;;  %v995_v61 = vld [vmem:[#allocation3 + $0xc8] sm:$0xff] }
  0x59   : > { %1398 = vmatprep.subr.mxu1 %v1526_v40 }
  0x5a   : > { %1399 = vmatpush3.msra.mxu1 %v1253_v1  ;;  %v992_v1 = vld [vmem:[#allocation3 + $0xb0] sm:$0xff] }
  0x5b   : > { %1400 = vmatprep.subr.mxu1 %v1526_v40 }
  0x5c   : > { %1401 = vmatpush3.msra.mxu1 %v1252_v3  ;;  %v990_v3 = vld [vmem:[#allocation3 + $0xa0] sm:$0xff] }
  0x5d   : > { %1402 = vmatprep.subr.mxu1 %v1526_v40 }
  0x5e   : > { %1403 = vmatpush3.msra.mxu1 %v1251_v8  ;;  %v985_v8 = vld [vmem:[#allocation3 + $0x78] sm:$0xff] }
  0x5f   : > { %1426 = vmatprep.subr.mxu1 %v1526_v40 }
  0xef   : > { %v1349_v42 = vpop.f32.mrf.mxu1 }
  0xf1   : > { %v446_v43 = vpop.f32.mrf.mxu1 }
  0xff   : > { %v1368_v44 = vpop.f32.mrf.mxu1 }
 0x100   : > { %v531_v46 = vadd.f32 %v1368_v44, %v1349_v42 }
 0x101   : > { %v525_v45 = vpop.f32.mrf.mxu1 }
 0x102   : > { %v526_v51 = vadd.f32 %v525_v45, %v446_v43 }
 0x10f   : > { %v1387_v49 = vpop.f32.mrf.mxu1 }
 0x110   : > { %v629_v52 = vadd.f32 %v1387_v49, %v531_v46 }
 0x111   : > { %v619_v55 = vpop.f32.mrf.mxu1 }
 0x112   : > { %v638_v56 = vadd.f32 %v1250_v50, %v629_v52  ;;  %v628_v57 = vadd.f32 %v619_v55, %v526_v51  ;;  %v999_v55 = vld [vmem:[#allocation3 + $0xe8] sm:$0xff] }
 0x114   : > { %v637_v60 = vadd.f32 %v1250_v50, %v628_v57  ;;  %v640_v63 = vmax.f32 %v638_v56, 0.0  ;;  %v1270_v50 = vld [vmem:[%s1847_s4] ss:$0 sm:$0xff]  ;;  %v998_v57 = vld [vmem:[#allocation3 + $0xe0] sm:$0xff] }
 0x116   : > { %v639_v0 = vmax.f32 %v637_v60, 0.0  ;;  %v651_v6 = vrot.slane %v640_v63, 1  ;;  %v996_v60 = vld [vmem:[#allocation3 + $0xd0] sm:$0xff] }
 0x118   : > { %v642_v5 = vrot.slane %v639_v0, 1  ;;  %v653_v9 = vmax.f32 %v640_v63, %v651_v6  ;;  %v994_v63 = vld [vmem:[#allocation3 + $0xc0] sm:$0xff]  ;;  %v987_v6 = vld [vmem:[#allocation3 + $0x88] sm:$0xff] }
 0x11a   : > { %v644_v7 = vmax.f32 %v639_v0, %v642_v5  ;;  %v993_v0 = vld [vmem:[#allocation3 + $0xb8] sm:$0xff]  ;;  %v988_v5 = vld [vmem:[#allocation3 + $0x90] sm:$0xff] }
 0x11c   : > { %646 = vrot.lane.b32.xlu0 %v644_v7, %s1528_s26 }
 0x120   : > { %655 = vrot.lane.b32.xlu0 %v653_v9, %s1528_s26 }
 0x18e   : > { %v647_v10 = vpop.permute.xlu0 %646 }
 0x18f   : > { %v649_v11 = vmax.f32 %v644_v7, %v647_v10  ;;  %v986_v7 = vld [vmem:[#allocation3 + $0x80] sm:$0xff]  ;;  %v983_v10 = vld [vmem:[#allocation3 + $0x68] sm:$0xff] }
 0x191   : > { %v660_v12 = vrot.slane %v649_v11, 7  ;;  %v662_v14 = vrot.slane %v649_v11, 1  ;;  %v664_v17 = vrot.slane %v649_v11, 2 }
 0x192   : > { %v656_v13 = vpop.permute.xlu0 %655 }
 0x193   : > { %v676_v15 = vsel %vm675_vm4, 0.0, %v660_v12  ;;  %v658_v16 = vmax.f32 %v653_v9, %v656_v13  ;;  %v984_v9 = vld [vmem:[#allocation3 + $0x70] sm:$0xff]  ;;  %v981_v12 = vld [vmem:[#allocation3 + $0x58] sm:$0xff] }
 0x194   : > { %v678_v18 = vsel %vm677_vm5, %v676_v15, %v649_v11  ;;  %v982_v11 = vld [vmem:[#allocation3 + $0x60] sm:$0xff]  ;;  %v980_v13 = vld [vmem:[#allocation3 + $0x50] sm:$0xff] }
 0x195   : > { %v680_v19 = vsel %vm679_vm6, %v678_v18, %v662_v14  ;;  %v667_v20 = vrot.slane %v658_v16, 3  ;;  %v669_v21 = vrot.slane %v658_v16, 4  ;;  %v673_v22 = vrot.slane %v658_v16, 6  ;;  %v979_v14 = vld [vmem:[#allocation3 + $0x48] sm:$0xff]  ;;  %v978_v15 = vld [vmem:[#allocation3 + $0x40] sm:$0xff] }
 0x196   : > { %v682_v23 = vsel %vm681_vm7, %v680_v19, %v664_v17  ;;  %v671_v25 = vrot.slane %v658_v16, 5  ;;  %v977_v16 = vld [vmem:[#allocation3 + $0x38] sm:$0xff]  ;;  %v976_v17 = vld [vmem:[#allocation3 + $0x30] sm:$0xff]  ;;  %v975_v18 = vld [vmem:[#allocation3 + $0x28] sm:$0xff] }
 0x197   : > { %v687_v24 = vsel %vm675_vm4, %v673_v22, 0.0  ;;  %v684_v26 = vsel %vm683_vm8, %v682_v23, %v667_v20  ;;  %v974_v19 = vld [vmem:[#allocation3 + $0x20] sm:$0xff]  ;;  %v973_v20 = vld [vmem:[#allocation3 + $0x18] sm:$0xff]  ;;  %v971_v22 = vld [vmem:[#allocation3 + $0x8] sm:$0xff] }
 0x198   : > { %v685_v27 = vsel %vm543_vm2, %v684_v26, %v669_v21  ;;  %v708_v30 = vrot.slane %v687_v24, 1  ;;  %v864_v42 = vrot.slane %v687_v24, 2  ;;  %v972_v21 = vld [vmem:[#allocation3 + $0x10] sm:$0xff]  ;;  %v970_v23 = vld [vmem:[#allocation3] sm:$0xff]  ;;  %v1033_v24 = vld [vmem:[#allocation3 + $0x1f8] sm:$0xff] }
 0x199   : > { %v686_v28 = vsel %vm369_vm0, %v685_v27, %v671_v25  ;;  %v1032_v25 = vld [vmem:[#allocation3 + $0x1f0] sm:$0xff]  ;;  %v1031_v26 = vld [vmem:[#allocation3 + $0x1e8] sm:$0xff]  ;;  %v1030_v27 = vld [vmem:[#allocation3 + $0x1e0] sm:$0xff] }
 0x19a   : > { %v707_v29 = vrot.slane %v686_v28, 1  ;;  %1424 = vmatmul.mubr.msk.f32.vlgmr.msra.gmra.mxu0 %vm375_vm1, %v686_v28  ;;  %v863_v39 = vrot.slane %v686_v28, 2  ;;  %v1029_v28 = vld [vmem:[#allocation3 + $0x1d8] sm:$0xff] }
 0x19c   : > { %v709_v32 = vsel %vm369_vm0, %v707_v29, %v708_v30  ;;  %v865_v43 = vsel %vm543_vm2, %v863_v39, %v864_v42  ;;  %v1028_v29 = vld [vmem:[#allocation3 + $0x1d0] sm:$0xff]  ;;  %v1027_v30 = vld [vmem:[#allocation3 + $0x1c8] sm:$0xff]  ;;  %v1018_v39 = vld [vmem:[#allocation3 + $0x180] sm:$0xff] }
 0x19d   : > { %1405 = vmatmul.mubr.msk.f32.vlgmr.msra.gmra.mxu1 %vm375_vm1, %v709_v32  ;;  %v1025_v32 = vld [vmem:[#allocation3 + $0x1b8] sm:$0xff]  ;;  %v1016_v42 = vld [vmem:[#allocation3 + $0x170] sm:$0xff] }
 0x19e   : > { %1427 = vmatpush3.msra.mxu1 %v1268_v31  ;;  %1442 = vmatprep.mubr.msk.f32.mxu1 %vm1527_vm3, %v1526_v40  ;;  %v1026_v31 = vld [vmem:[#allocation3 + $0x1c0] sm:$0xff] }
 0x19f   : > { %1428 = vmatprep.subr.mxu1 %v1526_v40 }
 0x1a0   : > { %1429 = vmatpush3.msra.mxu1 %v1267_v33  ;;  %v1024_v33 = vld [vmem:[#allocation3 + $0x1b0] sm:$0xff] }
 0x1a1   : > { %1430 = vmatprep.subr.mxu1 %v1526_v40 }
 0x1a2   : > { %1431 = vmatpush3.msra.mxu1 %v1266_v34  ;;  %v1023_v34 = vld [vmem:[#allocation3 + $0x1a8] sm:$0xff] }
 0x1a3   : > { %1432 = vmatprep.subr.mxu1 %v1526_v40 }
 0x1a4   : > { %1433 = vmatpush3.msra.mxu1 %v1265_v35  ;;  %v1022_v35 = vld [vmem:[#allocation3 + $0x1a0] sm:$0xff] }
 0x1a5   : > { %1434 = vmatprep.subr.mxu1 %v1526_v40 }
 0x1a6   : > { %1435 = vmatpush3.msra.mxu1 %v1264_v36  ;;  %v1021_v36 = vld [vmem:[#allocation3 + $0x198] sm:$0xff] }
 0x1a7   : > { %1436 = vmatprep.subr.mxu1 %v1526_v40 }
 0x1a8   : > { %1437 = vmatpush3.msra.mxu1 %v1263_v37  ;;  %v1020_v37 = vld [vmem:[#allocation3 + $0x190] sm:$0xff] }
 0x1a9   : > { %1438 = vmatprep.subr.mxu1 %v1526_v40 }
 0x1aa   : > { %1439 = vmatpush3.msra.mxu1 %v1262_v38  ;;  %v1019_v38 = vld [vmem:[#allocation3 + $0x188] sm:$0xff] }
 0x1ab   : > { %1440 = vmatprep.subr.mxu1 %v1526_v40  ;;  %v1000_v40 = vld [vmem:[#allocation3 + $0xf0] sm:$0xff] }
 0x1ac   : > { %1441 = vmatpush3.msra.mxu1 %v1261_v41  ;;  %1047 = vmatpush1.msra.mxu0 %v1000_v40  ;;  %v1017_v41 = vld [vmem:[#allocation3 + $0x178] sm:$0xff]  ;;  %v1003_v40 = vld [vmem:[#allocation3 + $0x108] sm:$0xff] }
 0x1ad   : > { %1443 = vmatmul.mubr.msk.f32.vlgmr.msra.gmra.mxu1 %vm375_vm1, %v865_v43  ;;  %1048 = vmatprep.subr.mxu0 %v999_v55  ;;  %v1015_v43 = vld [vmem:[#allocation3 + $0x168] sm:$0xff]  ;;  %v1002_v55 = vld [vmem:[#allocation3 + $0x100] sm:$0xff] }
 0x1ae   : > { %1049 = vmatpush1.msra.mxu0 %v998_v57 }
 0x1af   : > { %1050 = vmatprep.subr.mxu0 %v997_v58 }
 0x1b0   : > { %1051 = vmatpush1.msra.mxu0 %v996_v60 }
 0x1b1   : > { %1052 = vmatprep.subr.mxu0 %v995_v61 }
 0x1b2   : > { %1053 = vmatpush1.msra.mxu0 %v994_v63 }
 0x1b3   : > { %1054 = vmatprep.subr.mxu0 %v993_v0 }
 0x1b4   : > { %1055 = vmatpush1.msra.mxu0 %v992_v1 }
 0x1b5   : > { %1056 = vmatprep.subr.mxu0 %v991_v2 }
 0x1b6   : > { %1057 = vmatpush1.msra.mxu0 %v990_v3 }
 0x1b7   : > { %1058 = vmatprep.subr.mxu0 %v989_v4  ;;  %v1036_v4 = vlaneseq }
 0x1b8   : > { %1059 = vmatpush1.msra.mxu0 %v988_v5 }
 0x1b9   : > { %1060 = vmatprep.subr.mxu0 %v987_v6  ;;  %v1037_v5 = vshrl.u32 %v1036_v4, 7 }
 0x1ba   : > { %1061 = vmatpush1.msra.mxu0 %v986_v7 }
 0x1bb   : > { %1062 = vmatprep.subr.mxu0 %v985_v8  ;;  %v1038_v6 = vsub.s32 0, %v1037_v5  ;;  %v1042_v7 = vsub.s32 1, %v1037_v5 }
 0x1bc   : > { %1063 = vmatpush1.msra.mxu0 %v984_v9 }
 0x1bd   : > { %1064 = vmatprep.subr.mxu0 %v983_v10 }
 0x1be   : > { %1065 = vmatpush1.msra.mxu0 %v982_v11 }
 0x1bf   : > { %1066 = vmatprep.subr.mxu0 %v981_v12 }
 0x1c0   : > { %1067 = vmatpush1.msra.mxu0 %v980_v13 }
 0x1c1   : > { %1068 = vmatprep.subr.mxu0 %v979_v14 }
 0x1c2   : > { %1069 = vmatpush1.msra.mxu0 %v978_v15 }
 0x1c3   : > { %1070 = vmatprep.subr.mxu0 %v977_v16  ;;  %v1127_v16 = vld [vmem:[%s1850_s7] sm:$0x3] }
 0x1c4   : > { %1071 = vmatpush1.msra.mxu0 %v976_v17 }
 0x1c5   : > { %1072 = vmatprep.subr.mxu0 %v975_v18 }
 0x1c6   : > { %1073 = vmatpush1.msra.mxu0 %v974_v19 }
 0x1c7   : > { %1074 = vmatprep.subr.mxu0 %v973_v20  ;;  %v1132_v20 = vrot.slane %v1127_v16, %v1038_v6 }
 0x1c8   : > { %1075 = vmatpush1.msra.mxu0 %v972_v21 }
 0x1c9   : > { %1076 = vmatprep.subr.mxu0 %v971_v22 }
 0x1ca   : > { %1077 = vmatpush1.msra.mxu0 %v970_v23 }
 0x1cb   : > { %1078 = vmatprep.subr.mxu0 %v1033_v24 }
 0x1cc   : > { %1079 = vmatpush2.msra.mxu0 %v1032_v25  ;;  %v1136_v25 = vrot.slane %v1127_v16, %v1042_v7 }
 0x1cd   : > { %1080 = vmatprep.subr.mxu0 %v1031_v26 }
 0x1ce   : > { %1081 = vmatpush2.msra.mxu0 %v1030_v27 }
 0x1cf   : > { %1082 = vmatprep.subr.mxu0 %v1029_v28 }
 0x1d0   : > { %1083 = vmatpush2.msra.mxu0 %v1028_v29 }
 0x1d1   : > { %1084 = vmatprep.subr.mxu0 %v1027_v30 }
 0x1d2   : > { %1085 = vmatpush2.msra.mxu0 %v1026_v31 }
 0x1d3   : > { %1086 = vmatprep.subr.mxu0 %v1025_v32  ;;  %v1146_v32 = vld [vmem:[#allocation2] sm:$0x1] }
 0x1d4   : > { %1087 = vmatpush2.msra.mxu0 %v1024_v33 }
 0x1d5   : > { %1088 = vmatprep.subr.mxu0 %v1023_v34 }
 0x1d6   : > { %1089 = vmatpush2.msra.mxu0 %v1022_v35 }
 0x1d7   : > { %1090 = vmatprep.subr.mxu0 %v1021_v36 }
 0x1d8   : > { %1091 = vmatpush2.msra.mxu0 %v1020_v37 }
 0x1d9   : > { %1092 = vmatprep.subr.mxu0 %v1019_v38 }
 0x1da   : > { %1093 = vmatpush2.msra.mxu0 %v1018_v39 }
 0x1db   : > { %1094 = vmatprep.subr.mxu0 %v1017_v41 }
 0x1dc   : > { %1095 = vmatpush2.msra.mxu0 %v1016_v42 }
 0x1dd   : > { %1096 = vmatprep.subr.mxu0 %v1015_v43 }
 0x25a   : > { %v850_v44 = vpop.f32.mrf.mxu0 }
 0x25c   : > { %v1425_v45 = vpop.f32.mrf.mxu0 }
 0x25d   : > { %v778_v46 = vpop.f32.mrf.mxu1  ;;  %v1013_v45 = vld [vmem:[#allocation3 + $0x158] sm:$0xff] }
 0x25e   : > { %v851_v48 = vadd.f32 %v850_v44, %v778_v46  ;;  %v1014_v44 = vld [vmem:[#allocation3 + $0x160] sm:$0xff]  ;;  %v1012_v46 = vld [vmem:[#allocation3 + $0x150] sm:$0xff] }
 0x25f   : > { %v1406_v47 = vpop.f32.mrf.mxu1  ;;  %1097 = vmatpush2.msra.mxu0 %v1014_v44 }
 0x260   : > { %v1011_v47 = vld [vmem:[#allocation3 + $0x148] sm:$0xff]  ;;  %1098 = vmatprep.subr.mxu0 %v1013_v45 }
 0x261   : > { %1099 = vmatpush2.msra.mxu0 %v1012_v46 }
 0x262   : > { %1100 = vmatprep.subr.mxu0 %v1011_v47 }
 0x26d   : > { %v934_v49 = vpop.f32.mrf.mxu1 }
 0x26e   : > { %v938_v51 = vadd.f32 %v934_v49, %v851_v48  ;;  %v1010_v48 = vld [vmem:[#allocation3 + $0x140] sm:$0xff]  ;;  %v1009_v49 = vld [vmem:[#allocation3 + $0x138] sm:$0xff] }
 0x26f   : > { %v1444_v52 = vpop.f32.mrf.mxu1  ;;  %1101 = vmatpush2.msra.mxu0 %v1010_v48 }
 0x270   : > { %v946_v53 = vadd.f32 %v1270_v50, %v938_v51  ;;  %v1008_v50 = vld [vmem:[#allocation3 + $0x130] sm:$0xff]  ;;  %v1007_v51 = vld [vmem:[#allocation3 + $0x128] sm:$0xff]  ;;  %1102 = vmatprep.subr.mxu0 %v1009_v49  ;;  %v1006_v52 = vld [vmem:[#allocation3 + $0x120] sm:$0xff] }
 0x271   : > { %1103 = vmatpush2.msra.mxu0 %v1008_v50 }
 0x272   : > { %v947_v56 = vmax.f32 %v946_v53, 0.0  ;;  %1104 = vmatprep.subr.mxu0 %v1007_v51  ;;  %v1005_v53 = vld [vmem:[#allocation3 + $0x118] sm:$0xff] }
 0x273   : > { %1105 = vmatpush2.msra.mxu0 %v1006_v52 }
 0x274   : > { %v949_v59 = vrot.slane %v947_v56, 1  ;;  %1106 = vmatprep.subr.mxu0 %v1005_v53 }
 0x275   : > { %1107 = vmatpush2.msra.mxu0 %v1004_v54 }
 0x276   : > { %v1820_v62 = vmax.f32 %v947_v56, %v949_v59  ;;  %1108 = vmatprep.subr.mxu0 %v1003_v40 }
 0x277   : > { %1109 = vmatpush2.msra.mxu0 %v1002_v55 }
 0x278   : > { %953 = vrot.lane.b32.xlu1 %v1820_v62, %s1528_s26 }
 0x2ea   : > { %v954_v56 = vpop.permute.xlu1 %953 }
 0x2eb   : > { %v956_v57 = vmax.f32 %v1820_v62, %v954_v56  ;;  %v1034_v62 = vld [vmem:[%s1849_s6] sm:$0x3] }
 0x2ec   : > { %v1039_v8 = vrot.slane %v1034_v62, %v1038_v6  ;;  %v1043_v9 = vrot.slane %v1034_v62, %v1042_v7 }
 0x2ed   : > { %v958_v58 = vrot.slane %v956_v57, 2  ;;  %v964_v59 = vrot.slane %v956_v57, 6  ;;  %v962_v1 = vrot.slane %v956_v57, 4 }
 0x2ef   : > { %v1470_v60 = vpack.i.bf16 %v958_v58, %v964_v59 }
 0x2f1   : > { %1471 = vrot.lane.b32.xlu1 %v1470_v60, %s1528_s26 }
 0x363   : > { %v1472_v61 = vpop.permute.xlu1 %1471 }
 0x364   : > { %v1474_v63 = vunpack.i.h.bf16 %v1472_v61  ;;  %v1473_v0 = vunpack.i.l.bf16 %v1472_v61 }
 0x366   : > { %v969_v2 = vsel %vm375_vm1, %v962_v1, %v1473_v0  ;;  %v968_v3 = vsel %vm375_vm1, %v956_v57, %v1474_v63 }
 0x367   : > { %1110 = vmatprep.mubr.f32.mxu0 %v969_v2 }
 0x368   : > { %1111 = vmatmul.mubr.f32.vlgmr.msra.gmra.mxu0 %v968_v3 }
 0x428   : > { %v1112_v10 = vpop.f32.mrf.mxu0 }
 0x429   : > { %v1113_v11 = vadd.f32 %v1112_v10, %v1039_v8 }
 0x42a   : > { %v1114_v12 = vpop.f32.mrf.mxu0 }
 0x42b   : > { %v1119_v13 = vmul.f32 0.70710677, %v1113_v11  ;;  %v1115_v14 = vadd.f32 %v1114_v12, %v1043_v9  ;;  %v1117_v18 = vmul.f32 0.5, %v1113_v11 }
 0x42d   : > { %1475 = verf.f32 %v1119_v13  ;;  %v1120_v15 = vmul.f32 0.70710677, %v1115_v14  ;;  %v1118_v23 = vmul.f32 0.5, %v1115_v14 }
 0x42f   : > { %1477 = verf.f32 %v1120_v15 }
 0x43a   : > { %v1476_v17 = vpop.eup %1475 }
 0x43b   : > { %v1123_v19 = vadd.f32 1.0, %v1476_v17 }
 0x43c   : > { %v1478_v21 = vpop.eup %1477 }
 0x43d   : > { %v1125_v22 = vmul.f32 %v1123_v19, %v1117_v18  ;;  %v1124_v24 = vadd.f32 1.0, %v1478_v21 }
 0x43f   : > { %v1126_v26 = vmul.f32 %v1124_v24, %v1118_v23  ;;  %v1139_v27 = vmul.f32 %v1132_v20, %v1125_v22 }
 0x441   : > { %v1140_v28 = vmul.f32 %v1136_v25, %v1126_v26  ;;  %v1141_v29 = vsel %vm675_vm4, %v1139_v27, 0.0 }
 0x443   : > { %v1142_v30 = vsel %vm675_vm4, %v1140_v28, 0.0 }
 0x444   : > { %v1143_v31 = vadd.f32 %v1142_v30, %v1141_v29 }
 0x446   : > { %1144 = vadd.xlane.f32.xlu0 %v1143_v31 }
 0x4cf   : > { %v1145_v33 = vpop.xlane.xlu0 %1144 }
 0x4d0   : > { %v1147_v34 = vadd.f32 %v1146_v32, %v1145_v33 }
 0x4d2   : > { %v1149_v35 = vmul.f32 0.70710677, %v1147_v34  ;;  %v1148_v37 = vmul.f32 0.5, %v1147_v34 }
 0x4d4   : > { %1479 = verf.f32 %v1149_v35 }
 0x4e1   : > { %v1480_v36 = vpop.eup %1479 }
 0x4e2   : > { %v1151_v38 = vadd.f32 1.0, %v1480_v36 }
 0x4e4   : > { %v1152_v39 = vmul.f32 %v1151_v38, %v1148_v37 }
 0x4e6   : > { %v1271_v41 = vmul.f32 -1.442695, %v1152_v39 }
 0x4e8   : > { %1481 = vpow2.f32 %v1271_v41 }
 0x4f5   : > { %v1482_v42 = vpop.eup %1481 }
 0x4f6   : > { %v1156_v43 = vadd.f32 1.0, %v1482_v42 }
 0x4f8   : > { %1483 = vrcp.f32 %v1156_v43 }
 0x505   : > { %v1484_v44 = vpop.eup %1483 }
 0x506   : > { %1160 = vst.msk [vmem:[%s345_s10] sm:$0x1] %vm1159_vm9, %v1484_v44 }
 0x507 PF: > { %s22_s11 = sadd.s32 1, %s1521_s11  }
 0x508   : > { %p19_p1 = scmp.ge.s32.totalorder %s22_s11, 4  }
 0x50a   :  { %21 = sbr.rel (!%p19_p1) target bundleno = 4 (0x4), region = 95 }
 0x50f   :  { %1178 = vsyncpa [#allocation4], 1 }
 0x510   :  { %1180 = vsyncpa [#allocation4 + $0x1], 1 }

</bundles_post_ra>
